<compile_context>
chip_gen: v7x
topology: tpu7x:2x2x1
jax: 0.10.0
libtpu: 0.0.40
codegen_flags: <defaults>
</compile_context>

<pallas_src>
import jax
import jax.numpy as jnp
from jax.experimental import pallas as pl
from jax.experimental.pallas import tpu as pltpu

N_QUBITS = 7                 # statevector dim 128 = one lane vector
N_LAYERS = 3
DIM = 2 ** N_QUBITS          # 128
MAX_TILE_B = 512             # batch tile (MXU path -> vreg pressure is low)


def quantum_circuit_kernel(x_ref, u_t_ref, bits_ref, signs_ref, out_ref):
    """One batch tile of the full circuit.

    x_ref     : (TB, N_QUBITS)   f32  input RY angles (per sample)
    u_t_ref   : (DIM, DIM)       f32  transposed composed unitary of all
                                      variational layers (batch independent)
    bits_ref  : (N_QUBITS, DIM)  f32  bit_q(i) table (1.0 where bit q set)
    signs_ref : (DIM, DIM)       f32  col q (<7): 1-2*bit_q(i); cols >=7: 0
    out_ref   : (TB, DIM)        f32  cols 0..6 hold <PauliZ(q)>; rest 0
    """
    x = x_ref[...]
    half = x * 0.5
    cx = jnp.cos(half)                       # (TB, Q)
    sx = jnp.sin(half)
    bits = bits_ref[...]                     # (Q, DIM), loaded once

    # --- encoding: product state, amplitude_i = prod_q (cos if bit_q=0 else sin)
    b0 = bits[0:1, :]
    state = cx[:, 0:1] * (1.0 - b0) + sx[:, 0:1] * b0          # (TB, DIM)
    for q in range(1, N_QUBITS):
        bq = bits[q:q + 1, :]
        state = state * (cx[:, q:q + 1] * (1.0 - bq) + sx[:, q:q + 1] * bq)

    # --- all variational layers folded into one 128x128 real unitary (MXU)
    state = jnp.dot(state, u_t_ref[...], preferred_element_type=jnp.float32)

    # --- measurement: <PauliZ(q)> = probs @ signs  (MXU, one dense store)
    probs = state * state
    out_ref[...] = jnp.dot(probs, signs_ref[...],
                           preferred_element_type=jnp.float32)


def _bit(idx, q):
    return (idx >> (N_QUBITS - 1 - q)) & 1


def _build_tables():
    idx = jnp.arange(DIM, dtype=jnp.int32)
    bits = jnp.stack([_bit(idx, q) for q in range(N_QUBITS)]
                     ).astype(jnp.float32)                     # (Q, DIM)
    signs = jnp.zeros((DIM, DIM), jnp.float32)
    signs = signs.at[:, :N_QUBITS].set((1.0 - 2.0 * bits).T)   # (DIM, DIM)
    return bits, signs


def _build_layer_unitary_T(weights):
    """Compose all N_LAYERS x (CNOT ring + RY layer) into one real unitary U.

    Gates applied in circuit order G1..Gm give U = Gm @ ... @ G1; the kernel
    applies it to row-vector states as state @ U.T.
    """
    idx = jnp.arange(DIM, dtype=jnp.int32)
    eye = jnp.eye(DIM, dtype=jnp.float32)
    U = eye
    for j in range(N_LAYERS):
        # CNOT ring: psi'[i] = psi[i ^ stride_t] if bit_ctrl(i) else psi[i]
        for k in range(N_QUBITS):
            tgt = (k + 1) % N_QUBITS
            stride_t = 1 << (N_QUBITS - 1 - tgt)
            ctrl = _bit(idx, k).astype(bool)
            perm = jnp.where(ctrl, idx ^ stride_t, idx)
            U = eye[perm] @ U
        # RY layer: G[i,i] = c, G[i, i^stride] = -s if bit_q(i)==0 else +s
        for q in range(N_QUBITS):
            theta = weights[j, q]
            c = jnp.cos(theta * 0.5)
            s = jnp.sin(theta * 0.5)
            stride = 1 << (N_QUBITS - 1 - q)
            sign = 1.0 - 2.0 * _bit(idx, q).astype(jnp.float32)
            G = c * eye + (-s * sign)[:, None] * eye[idx ^ stride]
            U = G @ U
    return U.T


@jax.jit
def _quantum_layer_pallas(x, weights):
    B = x.shape[0]
    bits, signs = _build_tables()
    u_t = _build_layer_unitary_T(weights)    # recomputed whenever weights change

    tile_b = B if B <= MAX_TILE_B else MAX_TILE_B
    grid = (pl.cdiv(B, tile_b),)

    out = pl.pallas_call(
        quantum_circuit_kernel,
        out_shape=jax.ShapeDtypeStruct((B, DIM), jnp.float32),
        grid=grid,
        in_specs=[
            pl.BlockSpec((tile_b, N_QUBITS), lambda b: (b, 0)),   # x (batched)
            pl.BlockSpec((DIM, DIM),         lambda b: (0, 0)),   # U^T
            pl.BlockSpec((N_QUBITS, DIM),    lambda b: (0, 0)),   # bit table
            pl.BlockSpec((DIM, DIM),         lambda b: (0, 0)),   # sign table
        ],
        out_specs=pl.BlockSpec((tile_b, DIM), lambda b: (b, 0)),
        compiler_params=pltpu.CompilerParams(
            dimension_semantics=("parallel",)),
    )(x, u_t, bits, signs)
    return out[:, :N_QUBITS]


def quantum_layer_forward(x, weights):
    # mirror torch forward: 1-D input gets an implicit batch dim
    if x.ndim == 1:
        x = x[None, :]
    return _quantum_layer_pallas(x, weights)


def reference_forward(x, weights):
    """Pure-JAX statevector reference (same PennyLane wire convention)."""
    idx = jnp.arange(DIM)

    def bit(q):
        return ((idx >> (N_QUBITS - 1 - q)) & 1).astype(jnp.float32)

    def ry(state, q, theta):
        stride = 1 << (N_QUBITS - 1 - q)
        p = state[:, idx ^ stride]
        b1 = bit(q)[None, :]
        c = jnp.cos(theta * 0.5)
        s = jnp.sin(theta * 0.5)
        return c * state - s * (1.0 - 2.0 * b1) * p

    def cnot(state, ctrl, tgt):
        stride_t = 1 << (N_QUBITS - 1 - tgt)
        p = state[:, idx ^ stride_t]
        bc = bit(ctrl)[None, :]
        return bc * p + (1.0 - bc) * state

    B = x.shape[0]
    state = jnp.zeros((B, DIM), jnp.float32).at[:, 0].set(1.0)
    for q in range(N_QUBITS):
        state = ry(state, q, x[:, q:q + 1])
    for j in range(N_LAYERS):
        for k in range(N_QUBITS):
            state = cnot(state, k, (k + 1) % N_QUBITS)
        for q in range(N_QUBITS):
            state = ry(state, q, weights[j, q])
    probs = state * state
    zs = [jnp.sum(probs * (1.0 - 2.0 * bit(q))[None, :], axis=1)
          for q in range(N_QUBITS)]
    return jnp.stack(zs, axis=1)


if __name__ == "__main__":
    key = jax.random.PRNGKey(0)
    kx, kw = jax.random.split(key)

    B = 8
    x = jax.random.uniform(kx, (B, N_QUBITS), jnp.float32,
                           minval=-jnp.pi, maxval=jnp.pi)
    # deterministic "parameters": TorchLayer default init is U(0, 2*pi)
    weights = jax.random.uniform(kw, (N_LAYERS, N_QUBITS), jnp.float32,
                                 minval=0.0, maxval=2.0 * jnp.pi)

    out = quantum_layer_forward(x, weights)
    out = jax.block_until_ready(out)

    assert out.shape == (B, N_QUBITS) and out.dtype == jnp.float32

    ref = reference_forward(x, weights)
    if not jnp.allclose(out, ref, atol=1e-3, rtol=1e-3):
        raise AssertionError(f"mismatch vs reference:\n{out}\n{ref}")

    print("KERNEL_OK")
</pallas_src>

<mosaic_0001>
module attributes {stable_mosaic.version = 11 : i64} {
  func.func @quantum_circuit_kernel(%arg0: i32, %arg1: memref<8x7xf32, #tpu.memory_space<vmem>>, %arg2: memref<128x128xf32, #tpu.memory_space<vmem>>, %arg3: memref<7x128xf32, #tpu.memory_space<vmem>>, %arg4: memref<128x128xf32, #tpu.memory_space<vmem>>, %arg5: memref<8x128xf32, #tpu.memory_space<vmem>>) attributes {dimension_semantics = [#tpu.dimension_semantics<parallel>], iteration_bounds = array<i64: 1>, scalar_prefetch = 0 : i64, scratch_operands = 0 : i64, tpu.core_type = #tpu.core_type<tc>, window_params = [{transform_indices = @transform_0, window_bounds = array<i64: 8, 7>}, {pipeline_mode = #tpu.pipeline_mode<synchronous>, transform_indices = @transform_1, window_bounds = array<i64: 128, 128>}, {pipeline_mode = #tpu.pipeline_mode<synchronous>, transform_indices = @transform_2, window_bounds = array<i64: 7, 128>}, {pipeline_mode = #tpu.pipeline_mode<synchronous>, transform_indices = @transform_3, window_bounds = array<i64: 128, 128>}, {transform_indices = @transform_4, window_bounds = array<i64: 8, 128>}]} {
    %c0 = arith.constant 0 : index
    %c0_0 = arith.constant 0 : index
    %0 = vector.load %arg1[%c0, %c0_0] : memref<8x7xf32, #tpu.memory_space<vmem>>, vector<8x7xf32>
    %cst = arith.constant 5.000000e-01 : f32
    %1 = vector.broadcast %cst : f32 to vector<8x7xf32>
    %2 = arith.mulf %0, %1 : vector<8x7xf32>
    %3 = math.cos %2 : vector<8x7xf32>
    %4 = math.sin %2 : vector<8x7xf32>
    %c0_1 = arith.constant 0 : index
    %c0_2 = arith.constant 0 : index
    %5 = vector.load %arg3[%c0_1, %c0_2] : memref<7x128xf32, #tpu.memory_space<vmem>>, vector<7x128xf32>
    %6 = vector.extract_strided_slice %5 {offsets = [0, 0], sizes = [1, 128], strides = [1, 1]} : vector<7x128xf32> to vector<1x128xf32>
    %7 = vector.extract_strided_slice %3 {offsets = [0, 0], sizes = [8, 1], strides = [1, 1]} : vector<8x7xf32> to vector<8x1xf32>
    %cst_3 = arith.constant 1.000000e+00 : f32
    %8 = vector.broadcast %cst_3 : f32 to vector<1x128xf32>
    %9 = arith.subf %8, %6 : vector<1x128xf32>
    %10 = vector.broadcast %7 : vector<8x1xf32> to vector<8x128xf32>
    %11 = vector.broadcast %9 : vector<1x128xf32> to vector<8x128xf32>
    %12 = arith.mulf %10, %11 : vector<8x128xf32>
    %13 = vector.extract_strided_slice %4 {offsets = [0, 0], sizes = [8, 1], strides = [1, 1]} : vector<8x7xf32> to vector<8x1xf32>
    %14 = vector.broadcast %13 : vector<8x1xf32> to vector<8x128xf32>
    %15 = vector.broadcast %6 : vector<1x128xf32> to vector<8x128xf32>
    %16 = arith.mulf %14, %15 : vector<8x128xf32>
    %17 = arith.addf %12, %16 : vector<8x128xf32>
    %18 = vector.extract_strided_slice %5 {offsets = [1, 0], sizes = [1, 128], strides = [1, 1]} : vector<7x128xf32> to vector<1x128xf32>
    %19 = vector.extract_strided_slice %3 {offsets = [0, 1], sizes = [8, 1], strides = [1, 1]} : vector<8x7xf32> to vector<8x1xf32>
    %cst_4 = arith.constant 1.000000e+00 : f32
    %20 = vector.broadcast %cst_4 : f32 to vector<1x128xf32>
    %21 = arith.subf %20, %18 : vector<1x128xf32>
    %22 = vector.broadcast %19 : vector<8x1xf32> to vector<8x128xf32>
    %23 = vector.broadcast %21 : vector<1x128xf32> to vector<8x128xf32>
    %24 = arith.mulf %22, %23 : vector<8x128xf32>
    %25 = vector.extract_strided_slice %4 {offsets = [0, 1], sizes = [8, 1], strides = [1, 1]} : vector<8x7xf32> to vector<8x1xf32>
    %26 = vector.broadcast %25 : vector<8x1xf32> to vector<8x128xf32>
    %27 = vector.broadcast %18 : vector<1x128xf32> to vector<8x128xf32>
    %28 = arith.mulf %26, %27 : vector<8x128xf32>
    %29 = arith.addf %24, %28 : vector<8x128xf32>
    %30 = arith.mulf %17, %29 : vector<8x128xf32>
    %31 = vector.extract_strided_slice %5 {offsets = [2, 0], sizes = [1, 128], strides = [1, 1]} : vector<7x128xf32> to vector<1x128xf32>
    %32 = vector.extract_strided_slice %3 {offsets = [0, 2], sizes = [8, 1], strides = [1, 1]} : vector<8x7xf32> to vector<8x1xf32>
    %cst_5 = arith.constant 1.000000e+00 : f32
    %33 = vector.broadcast %cst_5 : f32 to vector<1x128xf32>
    %34 = arith.subf %33, %31 : vector<1x128xf32>
    %35 = vector.broadcast %32 : vector<8x1xf32> to vector<8x128xf32>
    %36 = vector.broadcast %34 : vector<1x128xf32> to vector<8x128xf32>
    %37 = arith.mulf %35, %36 : vector<8x128xf32>
    %38 = vector.extract_strided_slice %4 {offsets = [0, 2], sizes = [8, 1], strides = [1, 1]} : vector<8x7xf32> to vector<8x1xf32>
    %39 = vector.broadcast %38 : vector<8x1xf32> to vector<8x128xf32>
    %40 = vector.broadcast %31 : vector<1x128xf32> to vector<8x128xf32>
    %41 = arith.mulf %39, %40 : vector<8x128xf32>
    %42 = arith.addf %37, %41 : vector<8x128xf32>
    %43 = arith.mulf %30, %42 : vector<8x128xf32>
    %44 = vector.extract_strided_slice %5 {offsets = [3, 0], sizes = [1, 128], strides = [1, 1]} : vector<7x128xf32> to vector<1x128xf32>
    %45 = vector.extract_strided_slice %3 {offsets = [0, 3], sizes = [8, 1], strides = [1, 1]} : vector<8x7xf32> to vector<8x1xf32>
    %cst_6 = arith.constant 1.000000e+00 : f32
    %46 = vector.broadcast %cst_6 : f32 to vector<1x128xf32>
    %47 = arith.subf %46, %44 : vector<1x128xf32>
    %48 = vector.broadcast %45 : vector<8x1xf32> to vector<8x128xf32>
    %49 = vector.broadcast %47 : vector<1x128xf32> to vector<8x128xf32>
    %50 = arith.mulf %48, %49 : vector<8x128xf32>
    %51 = vector.extract_strided_slice %4 {offsets = [0, 3], sizes = [8, 1], strides = [1, 1]} : vector<8x7xf32> to vector<8x1xf32>
    %52 = vector.broadcast %51 : vector<8x1xf32> to vector<8x128xf32>
    %53 = vector.broadcast %44 : vector<1x128xf32> to vector<8x128xf32>
    %54 = arith.mulf %52, %53 : vector<8x128xf32>
    %55 = arith.addf %50, %54 : vector<8x128xf32>
    %56 = arith.mulf %43, %55 : vector<8x128xf32>
    %57 = vector.extract_strided_slice %5 {offsets = [4, 0], sizes = [1, 128], strides = [1, 1]} : vector<7x128xf32> to vector<1x128xf32>
    %58 = vector.extract_strided_slice %3 {offsets = [0, 4], sizes = [8, 1], strides = [1, 1]} : vector<8x7xf32> to vector<8x1xf32>
    %cst_7 = arith.constant 1.000000e+00 : f32
    %59 = vector.broadcast %cst_7 : f32 to vector<1x128xf32>
    %60 = arith.subf %59, %57 : vector<1x128xf32>
    %61 = vector.broadcast %58 : vector<8x1xf32> to vector<8x128xf32>
    %62 = vector.broadcast %60 : vector<1x128xf32> to vector<8x128xf32>
    %63 = arith.mulf %61, %62 : vector<8x128xf32>
    %64 = vector.extract_strided_slice %4 {offsets = [0, 4], sizes = [8, 1], strides = [1, 1]} : vector<8x7xf32> to vector<8x1xf32>
    %65 = vector.broadcast %64 : vector<8x1xf32> to vector<8x128xf32>
    %66 = vector.broadcast %57 : vector<1x128xf32> to vector<8x128xf32>
    %67 = arith.mulf %65, %66 : vector<8x128xf32>
    %68 = arith.addf %63, %67 : vector<8x128xf32>
    %69 = arith.mulf %56, %68 : vector<8x128xf32>
    %70 = vector.extract_strided_slice %5 {offsets = [5, 0], sizes = [1, 128], strides = [1, 1]} : vector<7x128xf32> to vector<1x128xf32>
    %71 = vector.extract_strided_slice %3 {offsets = [0, 5], sizes = [8, 1], strides = [1, 1]} : vector<8x7xf32> to vector<8x1xf32>
    %cst_8 = arith.constant 1.000000e+00 : f32
    %72 = vector.broadcast %cst_8 : f32 to vector<1x128xf32>
    %73 = arith.subf %72, %70 : vector<1x128xf32>
    %74 = vector.broadcast %71 : vector<8x1xf32> to vector<8x128xf32>
    %75 = vector.broadcast %73 : vector<1x128xf32> to vector<8x128xf32>
    %76 = arith.mulf %74, %75 : vector<8x128xf32>
    %77 = vector.extract_strided_slice %4 {offsets = [0, 5], sizes = [8, 1], strides = [1, 1]} : vector<8x7xf32> to vector<8x1xf32>
    %78 = vector.broadcast %77 : vector<8x1xf32> to vector<8x128xf32>
    %79 = vector.broadcast %70 : vector<1x128xf32> to vector<8x128xf32>
    %80 = arith.mulf %78, %79 : vector<8x128xf32>
    %81 = arith.addf %76, %80 : vector<8x128xf32>
    %82 = arith.mulf %69, %81 : vector<8x128xf32>
    %83 = vector.extract_strided_slice %5 {offsets = [6, 0], sizes = [1, 128], strides = [1, 1]} : vector<7x128xf32> to vector<1x128xf32>
    %84 = vector.extract_strided_slice %3 {offsets = [0, 6], sizes = [8, 1], strides = [1, 1]} : vector<8x7xf32> to vector<8x1xf32>
    %cst_9 = arith.constant 1.000000e+00 : f32
    %85 = vector.broadcast %cst_9 : f32 to vector<1x128xf32>
    %86 = arith.subf %85, %83 : vector<1x128xf32>
    %87 = vector.broadcast %84 : vector<8x1xf32> to vector<8x128xf32>
    %88 = vector.broadcast %86 : vector<1x128xf32> to vector<8x128xf32>
    %89 = arith.mulf %87, %88 : vector<8x128xf32>
    %90 = vector.extract_strided_slice %4 {offsets = [0, 6], sizes = [8, 1], strides = [1, 1]} : vector<8x7xf32> to vector<8x1xf32>
    %91 = vector.broadcast %90 : vector<8x1xf32> to vector<8x128xf32>
    %92 = vector.broadcast %83 : vector<1x128xf32> to vector<8x128xf32>
    %93 = arith.mulf %91, %92 : vector<8x128xf32>
    %94 = arith.addf %89, %93 : vector<8x128xf32>
    %95 = arith.mulf %82, %94 : vector<8x128xf32>
    %c0_10 = arith.constant 0 : index
    %c0_11 = arith.constant 0 : index
    %96 = vector.load %arg2[%c0_10, %c0_11] : memref<128x128xf32, #tpu.memory_space<vmem>>, vector<128x128xf32>
    %cst_12 = arith.constant dense<0.000000e+00> : vector<8x128xf32>
    %97 = tpu.matmul %95, %96, %cst_12 {dimension_numbers = #tpu.dot_dimension_numbers<[1], [0], [0], [1], [0, 0, 1, 1], [], []>} : vector<8x128xf32>, vector<128x128xf32>, vector<8x128xf32> -> vector<8x128xf32>
    %98 = arith.mulf %97, %97 : vector<8x128xf32>
    %c0_13 = arith.constant 0 : index
    %c0_14 = arith.constant 0 : index
    %99 = vector.load %arg4[%c0_13, %c0_14] : memref<128x128xf32, #tpu.memory_space<vmem>>, vector<128x128xf32>
    %cst_15 = arith.constant dense<0.000000e+00> : vector<8x128xf32>
    %100 = tpu.matmul %98, %99, %cst_15 {dimension_numbers = #tpu.dot_dimension_numbers<[1], [0], [0], [1], [0, 0, 1, 1], [], []>} : vector<8x128xf32>, vector<128x128xf32>, vector<8x128xf32> -> vector<8x128xf32>
    %c0_16 = arith.constant 0 : index
    %c0_17 = arith.constant 0 : index
    %101 = vector.load %arg5[%c0_16, %c0_17] : memref<8x128xf32, #tpu.memory_space<vmem>>, vector<8x128xf32>
    tpu.vector_store %arg5[%c0_16, %c0_17], %100 {strides = array<i32>} : memref<8x128xf32, #tpu.memory_space<vmem>>, vector<8x128xf32>,
    return
  }
  func.func @transform_0(%arg0: i32) -> (i32, i32) {
    %c0_i32 = arith.constant 0 : i32
    %c0_i32_0 = arith.constant 0 : i32
    return %arg0, %c0_i32 : i32, i32
  }
  func.func @transform_1(%arg0: i32) -> (i32, i32) {
    %c0_i32 = arith.constant 0 : i32
    %c0_i32_0 = arith.constant 0 : i32
    %c0_i32_1 = arith.constant 0 : i32
    return %c0_i32, %c0_i32_0 : i32, i32
  }
  func.func @transform_2(%arg0: i32) -> (i32, i32) {
    %c0_i32 = arith.constant 0 : i32
    %c0_i32_0 = arith.constant 0 : i32
    %c0_i32_1 = arith.constant 0 : i32
    return %c0_i32, %c0_i32_0 : i32, i32
  }
  func.func @transform_3(%arg0: i32) -> (i32, i32) {
    %c0_i32 = arith.constant 0 : i32
    %c0_i32_0 = arith.constant 0 : i32
    %c0_i32_1 = arith.constant 0 : i32
    return %c0_i32, %c0_i32_0 : i32, i32
  }
  func.func @transform_4(%arg0: i32) -> (i32, i32) {
    %c0_i32 = arith.constant 0 : i32
    %c0_i32_0 = arith.constant 0 : i32
    return %arg0, %c0_i32 : i32, i32
  }
}

</mosaic_0001>

<bundles_post_ra>
// kernel: _quantum_layer_pallas.1
= control target key start
LH: loop header
LB: loop body
LE: loop exit
PB: predicated region body
PF: predicated region fallthrough
CT: control target
= control target key end

     0   :  { %v778_v1 = vmov 1   ;;  %v779_v2 = vmov 0   ;;  %s980_s0 = inlined_call_operand.vmem [shape: f32[8,7], index: 0, kind: input, shape index: {}]   ;;  %s981_s1 = inlined_call_operand.vmem [shape: f32[128,128], index: 1, kind: input, shape index: {}]   ;;  %s982_s2 = inlined_call_operand.vmem [shape: f32[7,128], index: 2, kind: input, shape index: {}]   ;;  %s983_s3 = inlined_call_operand.vmem [shape: f32[128,128], index: 3, kind: input, shape index: {}]   ;;  %s984_s4 = inlined_call_operand.hbm [shape: f32[8,128], index: 4, kind: output, shape index: {}]  }
   0x1   :  { %v18_v0 = vld [vmem:[%s980_s0] sm:$0xff]  ;;  %740 = vset.pattern.permute.xlu1 %v778_v1  ;;  %739 = vset.pattern.permute.xlu0 %v779_v2 }
   0x2   :  { %v823_v3 = vmul.f32 0.5, %v18_v0 }
   0x4   :  { %v23_v4 = vand.u32 2139095040, %v823_v3 }
   0x5   :  { %9 = vsyncpa [#allocation3], 0  ;;  %v20_v6 = vand.u32 2147483647, %v823_v3  ;;  %v780_v15 = vmov 683565275   ;;  %vm112_vm15 = vweird.f32 %v823_v3 }
   0x6   :  { %v24_v5 = vshrl.u32 %v23_v4, 23  ;;  %v781_v17 = vmov 2475754826   ;;  %v782_v19 = vmov 2131351028   ;;  %vm22_vm7 = vcmp.lt.s32.totalorder %v823_v3, 0 }
   0x7   :  { %v27_v9 = vand.u32 8388607, %v20_v6  ;;  %v783_v21 = vmov 2102212464   ;;  %v784_v23 = vmov 920167782  }
   0x8   :  { %v558_v7 = vadd.s32 4294967169, %v24_v5  ;;  %v785_v30 = vmov 1326507024   ;;  %vm21_vm8 = vcmp.le.f32.partialorder %v20_v6, 0.7853982  ;;  %s794_s26 = smov [#allocation2]  }
   0x9   :  { %v28_v12 = vor.u32 8388608, %v27_v9 }
   0xa   :  { %v30_v8 = vadd.s32 1, %v558_v7 }
   0xb   :  { %v68_v32 = vshll.u32 %v28_v12, 8 }
   0xc   :  { %vm31_vm0 = vcmp.gt.s32.totalorder %v30_v8, 0 }
   0xd   :  { %v32_v10 = vsel %vm31_vm0, %v30_v8, 0  ;;  %vm792_vm0 = vmmov 0  }
   0xe   :  { %v34_v11 = vand.u32 31, %v32_v10  ;;  %v33_v13 = vshrl.u32 %v32_v10, 5 }
  0x10   :  { %v35_v14 = vsub.s32 32, %v34_v11  ;;  %v37_v16 = vshll.u32 %v780_v15, %v34_v11  ;;  %v40_v18 = vshll.u32 %v781_v17, %v34_v11  ;;  %v43_v20 = vshll.u32 %v782_v19, %v34_v11 }
  0x11   :  { %v46_v22 = vshll.u32 %v783_v21, %v34_v11  ;;  %v49_v24 = vshll.u32 %v784_v23, %v34_v11  ;;  %vm52_vm1 = vcmp.lt.s32.totalorder %v33_v13, 1  ;;  %vm55_vm2 = vcmp.lt.s32.totalorder %v33_v13, 4 }
  0x12   :  { %v36_v25 = vshrl.u32 %v780_v15, %v35_v14  ;;  %v38_v26 = vshrl.u32 %v781_v17, %v35_v14  ;;  %v41_v27 = vshrl.u32 %v782_v19, %v35_v14  ;;  %v44_v28 = vshrl.u32 %v783_v21, %v35_v14 }
  0x13   :  { %v47_v29 = vshrl.u32 %v784_v23, %v35_v14  ;;  %v50_v31 = vshrl.u32 %v785_v30, %v35_v14  ;;  %vm53_vm3 = vcmp.lt.s32.totalorder %v33_v13, 2  ;;  %vm54_vm4 = vcmp.lt.s32.totalorder %v33_v13, 3 }
  0x14   :  { %v39_v33 = vor.u32 %v38_v26, %v37_v16  ;;  %v42_v34 = vor.u32 %v41_v27, %v40_v18  ;;  %v45_v35 = vor.u32 %v44_v28, %v43_v20 }
  0x15   :  { %v48_v36 = vor.u32 %v47_v29, %v46_v22  ;;  %v51_v37 = vor.u32 %v50_v31, %v49_v24 }
  0x16   :  { %v56_v38 = vsel %vm52_vm1, %v36_v25, %v39_v33  ;;  %v57_v39 = vsel %vm55_vm2, %v45_v35, 2102212464  ;;  %v60_v40 = vsel %vm52_vm1, %v39_v33, %v42_v34  ;;  %v64_v41 = vsel %vm52_vm1, %v42_v34, %v45_v35 }
  0x17   :  { %v58_v42 = vsel %vm54_vm4, %v42_v34, %v57_v39  ;;  %v61_v43 = vsel %vm55_vm2, %v48_v36, 920167782  ;;  %v65_v44 = vsel %vm55_vm2, %v51_v37, 1326507024  ;;  %v370_v37 = vld [vmem:[%s981_s1] sm:$0xff]  ;;  %v786_v39 = vmov 0.0|0.0  }
  0x18   :  { %v62_v45 = vsel %vm54_vm4, %v45_v35, %v61_v43  ;;  %v66_v46 = vsel %vm54_vm4, %v48_v36, %v65_v44  ;;  %v59_v47 = vsel %vm53_vm3, %v56_v38, %v58_v42  ;;  %670 = vmatprep.subr.bf16.mxu0 %v786_v39  ;;  %694 = vmatprep.subr.bf16.mxu1 %v786_v39  ;;  %v373_v42 = vld [vmem:[%s981_s1 + $0x18] sm:$0xff]  ;;  %v788_v44 = vmov 3  }
  0x19   :  { %v63_v48 = vsel %vm53_vm3, %v60_v40, %v62_v45  ;;  %v67_v49 = vsel %vm53_vm3, %v64_v41, %v66_v46  ;;  %v75_v54 = vmul.u32 %v68_v32, %v59_v47  ;;  %v787_v40 = vmov 2   ;;  %v372_v41 = vld [vmem:[%s981_s1 + $0x10] sm:$0xff]  ;;  %v374_v45 = vld [vmem:[%s981_s1 + $0x20] sm:$0xff]  ;;  %v375_v46 = vld [vmem:[%s981_s1 + $0x28] sm:$0xff] }
  0x1a   :  { %v829_v50 = vmul.u32.u64.low %v68_v32, %v67_v49  ;;  %v830_v51 = vmul.u32.u64.high %v68_v32, %v67_v49, %v829_v50  ;;  %v832_v52 = vmul.u32.u64.low %v68_v32, %v63_v48  ;;  %v833_v53 = vmul.u32.u64.high %v68_v32, %v63_v48, %v832_v52  ;;  %v376_v48 = vld [vmem:[%s981_s1 + $0x30] sm:$0xff]  ;;  %v377_v49 = vld [vmem:[%s981_s1 + $0x38] sm:$0xff] }
  0x1b   :  { %v674_v43 = vpack.c.bf16 %v373_v42, %v372_v41  ;;  %v677_v47 = vpack.c.bf16 %v375_v46, %v374_v45  ;;  %v789_v50 = vmov 4  }
  0x1c   :  { %vm77_vm5 = vc.u32 %v830_v51, %v832_v52  ;;  %v78_v55 = vadd.s32 1, %v833_v53  ;;  %v76_v2 = vadd.s32 %v832_v52, %v830_v51  ;;  %v790_v51 = vmov 5  }
  0x1d   :  { %v680_v52 = vpack.c.bf16 %v377_v49, %v376_v48 }
  0x1e   :  { %v79_v56 = vsel %vm77_vm5, %v78_v55, %v833_v53  ;;  %v378_v53 = vld [vmem:[%s981_s1 + $0x40] sm:$0xff]  ;;  %v791_v55 = vmov 6  }
  0x1f   :  { %v80_v57 = vadd.s32 %v79_v56, %v75_v54  ;;  %v379_v54 = vld [vmem:[%s981_s1 + $0x48] sm:$0xff] }
  0x20   :  { %v683_v56 = vpack.c.bf16 %v379_v54, %v378_v53 }
  0x21   :  { %v81_v58 = vadd.s32 536870912, %v80_v57 }
  0x23   :  { %v82_v59 = vshrl.u32 %v81_v58, 30  ;;  %v381_v58 = vld [vmem:[%s981_s1 + $0x58] sm:$0xff] }
  0x25   :  { %v83_v60 = vshll.u32 %v82_v59, 30  ;;  %v106_v17 = vsub.s32 4, %v82_v59 }
  0x27   :  { %v84_v61 = vsub.s32 %v80_v57, %v83_v60  ;;  %v107_v20 = vsel %vm22_vm7, %v106_v17, %v82_v59  ;;  %v380_v57 = vld [vmem:[%s981_s1 + $0x50] sm:$0xff]  ;;  %v382_v60 = vld [vmem:[%s981_s1 + $0x60] sm:$0xff] }
  0x28   :  { %v109_v22 = vsel %vm21_vm8, 0, %v107_v20  ;;  %v686_v59 = vpack.c.bf16 %v381_v58, %v380_v57  ;;  %v465_v17 = vld [vmem:[%s983_s3 + $0x40] sm:$0xff]  ;;  %v467_v20 = vld [vmem:[%s983_s3 + $0x50] sm:$0xff] }
  0x29   :  { %v86_v62 = vsub.s32 0, %v84_v61  ;;  %v216_v23 = vadd.s32 3, %v109_v22  ;;  %v113_v24 = vand.u32 3, %v109_v22 }
  0x2b   :  { %v559_v63 = vmin.u32 %v86_v62, %v84_v61  ;;  %v217_v25 = vand.u32 3, %v216_v23  ;;  %vm118_vm9 = vcmp.eq.s32.totalorder %v113_v24, 2  ;;  %vm115_vm11 = vcmp.eq.s32.totalorder %v113_v24, 0  ;;  %v469_v23 = vld [vmem:[%s983_s3 + $0x60] sm:$0xff] }
  0x2c   :  { %vm114_vm13 = vcmp.lt.s32.totalorder %v113_v24, 2  ;;  %v470_v24 = vld [vmem:[%s983_s3 + $0x68] sm:$0xff] }
  0x2d   :  { %v88_v0 = vclz %v559_v63  ;;  %vm222_vm10 = vcmp.eq.s32.totalorder %v217_v25, 2  ;;  %vm219_vm12 = vcmp.eq.s32.totalorder %v217_v25, 0  ;;  %vm218_vm14 = vcmp.lt.s32.totalorder %v217_v25, 2  ;;  %v384_v63 = vld [vmem:[%s981_s1 + $0x70] sm:$0xff] }
  0x2e   :  { %v713_v25 = vpack.c.bf16 %v470_v24, %v469_v23 }
  0x2f   :  { %v560_v1 = vadd.s32 4294967294, %v88_v0  ;;  %v385_v0 = vld [vmem:[%s981_s1 + $0x78] sm:$0xff] }
  0x31   :  { %vm561_vm6 = vcmp.lt.s32.totalorder %v560_v1, 0 }
  0x32   :  { %v91_v4 = vsel %vm561_vm6, 0, %v560_v1  ;;  %v692_v1 = vpack.c.bf16 %v385_v0, %v384_v63 }
  0x33   :  { %v92_v5 = vsub.s32 32, %v91_v4  ;;  %v93_v7 = vshll.u32 %v84_v61, %v91_v4  ;;  %v96_v8 = vsub.s32 4294967266, %v91_v4  ;;  %v383_v61 = vld [vmem:[%s981_s1 + $0x68] sm:$0xff]  ;;  %v457_v4 = vld [vmem:[%s983_s3] sm:$0xff] }
  0x34   :  { %v689_v62 = vpack.c.bf16 %v383_v61, %v382_v60 }
  0x35   :  { %v94_v9 = vshrl.u32 %v76_v2, %v92_v5  ;;  %v97_v10 = vadd.s32 127, %v96_v8  ;;  %v793_v2 = vmov 0.0   ;;  %v458_v5 = vld [vmem:[%s983_s3 + $0x8] sm:$0xff] }
  0x36   :  { %632 = vmatprep.mubr.msk.f32.mxu0 %vm792_vm0, %v793_v2  ;;  %667 = vmatprep.mubr.msk.f32.mxu1 %vm792_vm0, %v793_v2  ;;  %v695_v8 = vpack.c.bf16 %v458_v5, %v457_v4 }
  0x37   :  { %v95_v11 = vor.u32 %v94_v9, %v93_v7  ;;  %v98_v12 = vshll.u32 %v97_v10, 23  ;;  %v459_v7 = vld [vmem:[%s983_s3 + $0x10] sm:$0xff]  ;;  %v460_v9 = vld [vmem:[%s983_s3 + $0x18] sm:$0xff] }
  0x38   :  { %696 = vmatpush3.bf16.msra.mxu1 %v695_v8  ;;  %v698_v10 = vpack.c.bf16 %v460_v9, %v459_v7 }
  0x39   :  { %v99_v13 = vor.u32 4788187, %v98_v12  ;;  %v102_v14 = vcvt.s32.f32 %v95_v11  ;;  %697 = vmatprep.subr.bf16.mxu1 %v786_v39  ;;  %v461_v11 = vld [vmem:[%s983_s3 + $0x20] sm:$0xff]  ;;  %v462_v12 = vld [vmem:[%s983_s3 + $0x28] sm:$0xff] }
  0x3b   :  { %v100_v15 = vand.u32 2147483647, %v99_v13  ;;  %v701_v13 = vpack.c.bf16 %v462_v12, %v461_v11 }
  0x3c   :  { %699 = vmatpush3.bf16.msra.mxu1 %v698_v10 }
  0x3d   :  { %v103_v16 = vmul.f32 %v102_v14, %v100_v15  ;;  %700 = vmatprep.subr.bf16.mxu1 %v786_v39  ;;  %v463_v14 = vld [vmem:[%s983_s3 + $0x30] sm:$0xff]  ;;  %v464_v15 = vld [vmem:[%s983_s3 + $0x38] sm:$0xff] }
  0x3f   :  { %v104_v18 = vxor.u32 2147483648, %v103_v16 }
  0x40   :  { %702 = vmatpush3.bf16.msra.mxu1 %v701_v13 }
  0x41   :  { %v105_v19 = vsel %vm22_vm7, %v104_v18, %v103_v16  ;;  %v704_v16 = vpack.c.bf16 %v464_v15, %v463_v14  ;;  %703 = vmatprep.subr.bf16.mxu1 %v786_v39  ;;  %v466_v18 = vld [vmem:[%s983_s3 + $0x48] sm:$0xff] }
  0x42   :  { %v108_v21 = vsel %vm21_vm8, %v823_v3, %v105_v19  ;;  %v371_v3 = vld [vmem:[%s981_s1 + $0x8] sm:$0xff]  ;;  %v707_v19 = vpack.c.bf16 %v466_v18, %v465_v17  ;;  %s550_s1 = sshll.u32 %s794_s26, 4  ;;  %s551_s1 = int_to_ptr.vmem [resolvable:$true] %s550_s1 }
  0x43   :  { %750 = vcosq.f32 %v108_v21  ;;  %v671_v38 = vpack.c.bf16 %v371_v3, %v370_v37  ;;  %s754_s27 = scalar_lea.vmem %s551_s1, 128  ;;  %p759_p1 = scmp.lt.s32.totalorder %s551_s1, %s551_s1 }
  0x44   :  { %752 = vsinq.f32 %v108_v21  ;;  %705 = vmatpush3.bf16.msra.mxu1 %v704_v16  ;;  %v468_v21 = vld [vmem:[%s983_s3 + $0x58] sm:$0xff]  ;;  %p755_p0 = scmp.ne.s32.totalorder %s551_s1, %s754_s27  ;;  %p760_p2 = scmp.lt.s32.totalorder %s754_s27, %s754_s27 }
  0x45   :  { %672 = vmatpush3.bf16.msra.mxu0 %v671_v38  ;;  %706 = vmatprep.subr.bf16.mxu1 %v786_v39  ;;  %v710_v22 = vpack.c.bf16 %v468_v21, %v467_v20 }
  0x46   :  { %673 = vmatprep.subr.bf16.mxu0 %v786_v39  ;;  %p761_p3 = por %p760_p2, %p759_p1 }
  0x48   :  { %708 = vmatpush3.bf16.msra.mxu1 %v707_v19  ;;  %p762_p4 = pnand %p761_p3, %p755_p0 }
  0x49   :  { %675 = vmatpush3.bf16.msra.mxu0 %v674_v43  ;;  %709 = vmatprep.subr.bf16.mxu1 %v786_v39 }
  0x4a   :  { %676 = vmatprep.subr.bf16.mxu0 %v786_v39 }
  0x4c   :  { %711 = vmatpush3.bf16.msra.mxu1 %v710_v22 }
  0x4d   :  { %v751_v26 = vpop.eup %750  ;;  %678 = vmatpush3.bf16.msra.mxu0 %v677_v47  ;;  %712 = vmatprep.subr.bf16.mxu1 %v786_v39 }
  0x4e   :  { %v753_v27 = vpop.eup %752  ;;  %v119_v28 = vxor.u32 2147483648, %v751_v26  ;;  %679 = vmatprep.subr.bf16.mxu0 %v786_v39 }
  0x4f   :  { %v116_v6 = vxor.u32 2147483648, %v753_v27 }
  0x50   :  { %v120_v29 = vsel %vm118_vm9, %v119_v28, %v753_v27  ;;  %v224_v30 = vsel %vm222_vm10, %v119_v28, %v753_v27  ;;  %714 = vmatpush3.bf16.msra.mxu1 %v713_v25 }
  0x51   :  { %v117_v31 = vsel %vm115_vm11, %v751_v26, %v116_v6  ;;  %v221_v32 = vsel %vm219_vm12, %v751_v26, %v116_v6  ;;  %681 = vmatpush3.bf16.msra.mxu0 %v680_v52  ;;  %715 = vmatprep.subr.bf16.mxu1 %v786_v39  ;;  %v234_v6 = vlaneseq }
  0x52   :  { %v121_v33 = vsel %vm114_vm13, %v117_v31, %v120_v29  ;;  %v225_v34 = vsel %vm218_vm14, %v221_v32, %v224_v30  ;;  %682 = vmatprep.subr.bf16.mxu0 %v786_v39  ;;  %v227_v32 = vld [vmem:[%s982_s2] sm:$0x7f] }
  0x53   :  { %v844_v35 = vsel %vm112_vm15, nan, %v121_v33  ;;  %v226_v36 = vsel %vm112_vm15, nan, %v225_v34  ;;  %v235_v31 = vshrl.u32 %v234_v6, 7  ;;  %v472_v6 = vld [vmem:[%s983_s3 + $0x78] sm:$0xff] }
  0x54   :  { %251 = vperm.xlu1 %740, %v844_v35   ;;  %231 = vperm.xlu0 %739, %v844_v35  }
  0x55   :  { %684 = vmatpush3.bf16.msra.mxu0 %v683_v56  ;;  %v236_v33 = vsub.s32 0, %v235_v31  ;;  %v276_v37 = vsub.s32 2, %v235_v31  ;;  %v296_v38 = vsub.s32 3, %v235_v31  ;;  %v316_v47 = vsub.s32 4, %v235_v31 }
  0x56   :  { %685 = vmatprep.subr.bf16.mxu0 %v786_v39  ;;  %v336_v49 = vsub.s32 5, %v235_v31 }
  0x57   :  { %v247_v41 = vrot.slane %v227_v32, %v236_v33  ;;  %v286_v43 = vrot.slane %v227_v32, %v276_v37  ;;  %v306_v53 = vrot.slane %v227_v32, %v296_v38  ;;  %v326_v57 = vrot.slane %v227_v32, %v316_v47 }
  0x58   :  { %260 = vperm.xlu1 %740, %v226_v36   ;;  %241 = vperm.xlu0 %739, %v226_v36   ;;  %v346_v4 = vrot.slane %v227_v32, %v336_v49 }
  0x59   :  { %687 = vmatpush3.bf16.msra.mxu0 %v686_v59 }
  0x5a   :  { %688 = vmatprep.subr.bf16.mxu0 %v786_v39 }
  0x5c   :  { %742 = vset.pattern.permute.xlu1 %v787_v40  ;;  %741 = vset.pattern.permute.xlu0 %v787_v40 }
  0x5d   :  { %280 = vperm.xlu1 %742, %v226_v36   ;;  %271 = vperm.xlu0 %741, %v844_v35  }
  0x5e   :  { %690 = vmatpush3.bf16.msra.mxu0 %v689_v62  ;;  %v356_v62 = vsub.s32 6, %v235_v31 }
  0x5f   :  { %691 = vmatprep.subr.bf16.mxu0 %v786_v39 }
  0x60   :  { %v366_v8 = vrot.slane %v227_v32, %v356_v62 }
  0x61   :  { %743 = vset.pattern.permute.xlu1 %v788_v44  ;;  %744 = vset.pattern.permute.xlu0 %v788_v44 }
  0x62   :  { %291 = vperm.xlu1 %743, %v844_v35   ;;  %300 = vperm.xlu0 %744, %v226_v36  }
  0x63   :  { %693 = vmatpush3.bf16.msra.mxu0 %v692_v1 }
  0x66   :  { %745 = vset.pattern.permute.xlu1 %v789_v50  ;;  %746 = vset.pattern.permute.xlu0 %v790_v51 }
  0x67   :  { %311 = vperm.xlu1 %745, %v844_v35   ;;  %331 = vperm.xlu0 %746, %v844_v35  }
  0x6b   :  { %320 = vperm.xlu1 %745, %v226_v36   ;;  %749 = vset.pattern.permute.xlu0 %v791_v55 }
  0x6c   :  { %360 = vperm.xlu0 %749, %v226_v36  }
  0x6f   :  { %747 = vset.pattern.permute.xlu1 %v790_v51 }
  0x70   :  { %340 = vperm.xlu1 %747, %v226_v36   ;;  %v256_v36 = vsub.s32 1, %v235_v31 }
  0x72   :  { %v266_v39 = vrot.slane %v227_v32, %v256_v36 }
  0x74   :  { %748 = vset.pattern.permute.xlu1 %v791_v55 }
  0x75   :  { %351 = vperm.xlu1 %748, %v844_v35   ;;  %v228_v35 = vsub.f32 1.0, %v227_v32 }
  0x77   :  { %v237_v40 = vrot.slane %v228_v35, %v236_v33  ;;  %v257_v42 = vrot.slane %v228_v35, %v256_v36  ;;  %v277_v44 = vrot.slane %v228_v35, %v276_v37  ;;  %v297_v45 = vrot.slane %v228_v35, %v296_v38 }
  0x78   :  { %v317_v58 = vrot.slane %v228_v35, %v316_v47  ;;  %v337_v60 = vrot.slane %v228_v35, %v336_v49  ;;  %v357_v18 = vrot.slane %v228_v35, %v356_v62 }
  0xd3   :  { %v252_v26 = vpop.permute.xlu1 %251  ;;  %v232_v27 = vpop.permute.xlu0 %231 }
  0xd4   :  { %v238_v50 = vmul.f32 %v237_v40, %v232_v27  ;;  %v258_v54 = vmul.f32 %v257_v42, %v252_v26 }
  0xd7   :  { %v261_v28 = vpop.permute.xlu1 %260  ;;  %v242_v29 = vpop.permute.xlu0 %241 }
  0xd8   :  { %v267_v51 = vmul.f32 %v266_v39, %v261_v28  ;;  %v248_v52 = vmul.f32 %v247_v41, %v242_v29  ;;  %v471_v28 = vld [vmem:[%s983_s3 + $0x70] sm:$0xff] }
  0xd9   :  { %v716_v29 = vpack.c.bf16 %v472_v6, %v471_v28 }
  0xda   :  { %v268_v63 = vadd.f32 %v267_v51, %v258_v54  ;;  %v249_v0 = vadd.f32 %v248_v52, %v238_v50 }
  0xdb   :  { %717 = vmatpush3.bf16.msra.mxu1 %v716_v29 }
  0xdc   :  { %v281_v30 = vpop.permute.xlu1 %280  ;;  %v272_v34 = vpop.permute.xlu0 %271  ;;  %v269_v9 = vmul.f32 %v268_v63, %v249_v0 }
  0xdd   :  { %v287_v55 = vmul.f32 %v286_v43, %v281_v30  ;;  %v278_v56 = vmul.f32 %v277_v44, %v272_v34 }
  0xdf   :  { %v288_v5 = vadd.f32 %v287_v55, %v278_v56 }
  0xe1   :  { %v292_v3 = vpop.permute.xlu1 %291  ;;  %v301_v46 = vpop.permute.xlu0 %300  ;;  %v289_v16 = vmul.f32 %v288_v5, %v269_v9 }
  0xe2   :  { %v298_v1 = vmul.f32 %v297_v45, %v292_v3  ;;  %v307_v2 = vmul.f32 %v306_v53, %v301_v46 }
  0xe4   :  { %v308_v10 = vadd.f32 %v307_v2, %v298_v1 }
  0xe6   :  { %v312_v48 = vpop.permute.xlu1 %311  ;;  %v332_v61 = vpop.permute.xlu0 %331  ;;  %v309_v19 = vmul.f32 %v308_v10, %v289_v16 }
  0xe7   :  { %v318_v11 = vmul.f32 %v317_v58, %v312_v48  ;;  %v338_v13 = vmul.f32 %v337_v60, %v332_v61 }
  0xea   :  { %v321_v59 = vpop.permute.xlu1 %320 }
  0xeb   :  { %v327_v7 = vmul.f32 %v326_v57, %v321_v59  ;;  %v361_v15 = vpop.permute.xlu0 %360 }
  0xec   :  { %v367_v21 = vmul.f32 %v366_v8, %v361_v15 }
  0xed   :  { %v328_v17 = vadd.f32 %v327_v7, %v318_v11 }
  0xef   :  { %v341_v12 = vpop.permute.xlu1 %340  ;;  %v329_v23 = vmul.f32 %v328_v17, %v309_v19 }
  0xf0   :  { %v347_v14 = vmul.f32 %v346_v4, %v341_v12 }
  0xf2   :  { %v348_v20 = vadd.f32 %v347_v14, %v338_v13 }
  0xf4   :  { %v352_v22 = vpop.permute.xlu1 %351  ;;  %v349_v25 = vmul.f32 %v348_v20, %v329_v23 }
  0xf5   :  { %v358_v24 = vmul.f32 %v357_v18, %v352_v22 }
  0xf7   :  { %v368_v26 = vadd.f32 %v367_v21, %v358_v24 }
  0xf9   :  { %v369_v27 = vmul.f32 %v368_v26, %v349_v25 }
  0xfb   :  { %633 = vmatmul.mubr.f32.vlgmr.msra.gmra.mrb[0].mxu0 %v369_v27 }
 0x1ce   :  { %v452_v30 = vpop.f32.mrb[0].mxu0 }
 0x1cf   :  { %v456_v31 = vmul.f32 %v452_v30, %v452_v30  ;;  %v634_v32 = vpop.f32.mrb[1].mxu0 }
 0x1d1   :  { %668 = vmatmul.mubr.f32.vlgmr.msra.gmra.mrb[0].mxu1 %v456_v31 }
 0x2a4   :  { %v539_v33 = vpop.f32.mrb[0].mxu1 }
 0x2a5   :  { %543 = vst [vmem:[#allocation2] sm:$0xff] %v539_v33  ;;  %v669_v34 = vpop.f32.mrb[1].mxu1 }
 0x2a6   :  { %765 = shalt.err (!%p762_p4)
}
 0x2a7   :  { %s766_s29 = scalar_lea.hbm %s984_s4, 128 }
 0x2a8   :  { %p767_p5 = scmp.ne.s32.totalorder %s984_s4, %s766_s29  ;;  %p770_p6 = scmp.lt.u32.totalorder %s766_s29, %s984_s4 }
 0x2aa   :  { %p772_p7 = pnand %p770_p6, %p767_p5 }
 0x2ac   :  { %775 = shalt.err (!%p772_p7)
}
 0x2ad   :  { %553 = dma.vmem_to_hbm [thread:$0]  %s551_s1, 128, %s984_s4, [#allocation3]  }
 0x2ae   :  { %776 = dma.done.wait [#allocation3], 128  }
 0x2af   :  { %777 = vsyncadd [#allocation3], 4294967168 }
 0x2b0   :  { %557 = vsyncpa [#allocation3], 1 }

</bundles_post_ra>
